<compile_context>
chip_gen: v7x
topology: tpu7x:2x2x1
jax: 0.10.0
libtpu: 0.0.40
codegen_flags: <defaults>
</compile_context>

<pallas_src>
import functools

import jax
import jax.numpy as jnp
from jax.experimental import pallas as pl
from jax.experimental.pallas import tpu as pltpu


def _rmsnorm_kernel(x_ref, w_ref, o_ref, *, eps: float, inv_dim: float):
    # x_ref: (TR, D) in input dtype, w_ref: (1, D) f32, o_ref: (TR, D)
    x = x_ref[...].astype(jnp.float32)
    ms = jnp.sum(x * x, axis=-1, keepdims=True) * inv_dim   # (TR, 1) on XLU
    inv = jax.lax.rsqrt(ms + eps)                            # EUP rsqrt
    o_ref[...] = (x * inv * w_ref[...]).astype(o_ref.dtype)


def _round_up(x: int, m: int) -> int:
    return -(-x // m) * m


def _choose_row_tile(rows: int, dim: int, itemsize: int) -> int:
    """Pick a sublane-aligned row tile.

    Goal: the biggest VMEM-safe block (fewest grid steps) so the kernel runs at
    the HBM roofline; when several steps are needed, use an even count so a
    two-TC chip (v7x) gets balanced work from the "parallel" grid axis.
    """
    sublane = 8 * max(1, 4 // max(1, itemsize))   # 8 f32, 16 bf16, 32 int8
    r = _round_up(rows, sublane)
    if r <= 2 * sublane:
        return r

    # VMEM bytes held per row for one in-flight block:
    #   in + out tiles, double-buffered          -> 4 * dim * itemsize
    #   full-tile f32 upcast scratch (sub-32-bit) -> dim * 4 (compute block only)
    per_row_io = 4 * dim * itemsize
    per_row_scratch = dim * 4 if itemsize < 4 else 0
    budget = 24 << 20                              # >= 8 MiB under 32 MiB scoped
    cap = budget // (per_row_io + per_row_scratch)
    cap = max(sublane, (cap // sublane) * sublane)

    n_steps = -(-r // cap)
    if n_steps == 1:
        # Split once if each half is still a big (>= ~1.5 MiB) block: gives the
        # pipeline something to overlap and lets v7x's two TCs share the work.
        if r * dim * itemsize >= (3 << 20):
            n_steps = 2
    elif n_steps % 2:
        # Even step count balances v7x's two TensorCores; one extra multi-MiB
        # block costs ~0.35 us of step overhead on single-TC chips (negligible).
        n_steps += 1

    tile = _round_up(-(-r // n_steps), sublane)
    return min(max(tile, sublane), cap, r)


def rms_norm(x: jax.Array, weight: jax.Array, eps: float = 1e-6,
             row_tile: int | None = None) -> jax.Array:
    """RMSNorm over the last dimension, matching torch.nn.functional.rms_norm."""
    dim = weight.shape[0]
    assert x.shape[-1] == dim, "last dim of x must equal weight dim"

    orig_shape = x.shape
    x2d = x.reshape(-1, dim)
    rows = x2d.shape[0]
    itemsize = x.dtype.itemsize

    if row_tile is None:
        row_tile = _choose_row_tile(rows, dim, itemsize)

    grid = (pl.cdiv(rows, row_tile),)   # partial last block handled by Pallas
    w2d = weight.reshape(1, dim).astype(jnp.float32)   # pre-cast: resident block

    # Honest VMEM sizing: in/out double buffers + f32 upcast scratch + weight
    # + headroom; clamp to [8 MiB, 32 MiB] (safe on v5e/v6e/v7x scoped limits).
    block_bytes = row_tile * dim * itemsize
    scratch_bytes = row_tile * dim * 4 if itemsize < 4 else 0
    vmem_need = 4 * block_bytes + scratch_bytes + 2 * dim * 4 + (4 << 20)
    vmem_limit = int(min(max(vmem_need, 8 << 20), 32 << 20))

    out = pl.pallas_call(
        functools.partial(_rmsnorm_kernel, eps=float(eps), inv_dim=1.0 / dim),
        out_shape=jax.ShapeDtypeStruct((rows, dim), x.dtype),
        grid_spec=pltpu.PrefetchScalarGridSpec(
            num_scalar_prefetch=0,
            grid=grid,
            in_specs=[
                pl.BlockSpec((row_tile, dim), lambda i: (i, 0)),
                pl.BlockSpec((1, dim), lambda i: (0, 0)),  # constant -> no re-DMA
            ],
            out_specs=pl.BlockSpec((row_tile, dim), lambda i: (i, 0)),
        ),
        compiler_params=pltpu.CompilerParams(
            dimension_semantics=("parallel",),
            vmem_limit_bytes=vmem_limit),
    )(x2d, w2d)

    return out.reshape(orig_shape)


class ModelArgs:
    dim: int = 384
    eps = 1e-06


if __name__ == "__main__":
    args = ModelArgs()
    batch, seq, dim = 2, 8, args.dim

    key = jax.random.PRNGKey(0)
    x = jax.random.normal(key, (batch, seq, dim), dtype=jnp.float32)

    # Deterministic parameter init: nn.Parameter(torch.ones(dim))
    weight = jnp.ones((dim,), dtype=jnp.float32)

    y = rms_norm(x, weight, eps=args.eps)
    y = jax.block_until_ready(y)

    # Reference check in plain JAX.
    ms = jnp.mean(x.astype(jnp.float32) ** 2, axis=-1, keepdims=True)
    y_ref = x * jax.lax.rsqrt(ms + args.eps) * weight
    assert y.shape == x.shape and y.dtype == x.dtype
    assert jnp.allclose(y, y_ref, atol=1e-5, rtol=1e-5)

    print("KERNEL_OK")
</pallas_src>

<mosaic_0001>
module attributes {stable_mosaic.version = 11 : i64} {
  func.func @_rmsnorm_kernel(%arg0: i32, %arg1: memref<16x384xf32, #tpu.memory_space<vmem>>, %arg2: memref<1x384xf32, #tpu.memory_space<vmem>>, %arg3: memref<16x384xf32, #tpu.memory_space<vmem>>) attributes {dimension_semantics = [#tpu.dimension_semantics<parallel>], iteration_bounds = array<i64: 1>, scalar_prefetch = 0 : i64, scratch_operands = 0 : i64, tpu.core_type = #tpu.core_type<tc>, window_params = [{transform_indices = @transform_0, window_bounds = array<i64: 16, 384>}, {pipeline_mode = #tpu.pipeline_mode<synchronous>, transform_indices = @transform_1, window_bounds = array<i64: 1, 384>}, {transform_indices = @transform_2, window_bounds = array<i64: 16, 384>}]} {
    %c0 = arith.constant 0 : index
    %c0_0 = arith.constant 0 : index
    %0 = vector.load %arg1[%c0, %c0_0] : memref<16x384xf32, #tpu.memory_space<vmem>>, vector<16x384xf32>
    %1 = arith.mulf %0, %0 : vector<16x384xf32>
    %cst = arith.constant dense<0.000000e+00> : vector<16xf32>
    %2 = vector.multi_reduction <add>, %1, %cst [1] : vector<16x384xf32> to vector<16xf32>
    %3 = vector.shape_cast %2 : vector<16xf32> to vector<16x1xf32>
    %cst_1 = arith.constant 0.00260416674 : f32
    %4 = vector.broadcast %cst_1 : f32 to vector<16x1xf32>
    %5 = arith.mulf %3, %4 : vector<16x1xf32>
    %cst_2 = arith.constant 9.99999997E-7 : f32
    %6 = vector.broadcast %cst_2 : f32 to vector<16x1xf32>
    %7 = arith.addf %5, %6 : vector<16x1xf32>
    %8 = math.rsqrt %7 : vector<16x1xf32>
    %9 = vector.broadcast %8 : vector<16x1xf32> to vector<16x384xf32>
    %10 = arith.mulf %0, %9 : vector<16x384xf32>
    %c0_3 = arith.constant 0 : index
    %c0_4 = arith.constant 0 : index
    %11 = vector.load %arg2[%c0_3, %c0_4] : memref<1x384xf32, #tpu.memory_space<vmem>>, vector<1x384xf32>
    %12 = vector.broadcast %11 : vector<1x384xf32> to vector<16x384xf32>
    %13 = arith.mulf %10, %12 : vector<16x384xf32>
    %c0_5 = arith.constant 0 : index
    %c0_6 = arith.constant 0 : index
    %14 = vector.load %arg3[%c0_5, %c0_6] : memref<16x384xf32, #tpu.memory_space<vmem>>, vector<16x384xf32>
    tpu.vector_store %arg3[%c0_5, %c0_6], %13 {strides = array<i32>} : memref<16x384xf32, #tpu.memory_space<vmem>>, vector<16x384xf32>,
    return
  }
  func.func @transform_0(%arg0: i32) -> (i32, i32) {
    %c0_i32 = arith.constant 0 : i32
    %c0_i32_0 = arith.constant 0 : i32
    return %arg0, %c0_i32 : i32, i32
  }
  func.func @transform_1(%arg0: i32) -> (i32, i32) {
    %c0_i32 = arith.constant 0 : i32
    %c0_i32_0 = arith.constant 0 : i32
    %c0_i32_1 = arith.constant 0 : i32
    return %c0_i32, %c0_i32_0 : i32, i32
  }
  func.func @transform_2(%arg0: i32) -> (i32, i32) {
    %c0_i32 = arith.constant 0 : i32
    %c0_i32_0 = arith.constant 0 : i32
    return %arg0, %c0_i32 : i32, i32
  }
}

</mosaic_0001>

<bundles_post_ra>
// kernel: tpu_custom_call.1
= control target key start
LH: loop header
LB: loop body
LE: loop exit
PB: predicated region body
PF: predicated region fallthrough
CT: control target
= control target key end

     0   :  { %7 = vsyncpa [#allocation3], 0  ;;  %s212_s0 = inlined_call_operand.hbm [shape: f32[16,384], index: 0, kind: input, shape index: {}]   ;;  %s213_s1 = inlined_call_operand.vmem [shape: f32[1,384], index: 1, kind: input, shape index: {}]   ;;  %s214_s2 = inlined_call_operand.hbm [shape: f32[16,384], index: 2, kind: output, shape index: {}]  }
   0x1   :  { %8 = vsyncpa [#allocation4], 0  ;;  %s160_s9 = smov [#allocation2]   ;;  %s112_s13 = scalar_lea.hbm %s212_s0, 768 }
   0x2   :  { %s14_s10 = sshll.u32 %s160_s9, 4  ;;  %p113_p0 = scmp.ne.s32.totalorder %s212_s0, %s112_s13  ;;  %s15_s10 = int_to_ptr.vmem [resolvable:$true] %s14_s10 }
   0x3   :  { %p116_p1 = scmp.lt.u32.totalorder %s112_s13, %s212_s0 }
   0x5   :  { %p118_p2 = pnand %p116_p1, %p113_p0 }
   0x7   :  { %121 = shalt.err (!%p118_p2)
}
   0x8   :  { %s122_s18 = scalar_lea.vmem %s15_s10, 768  ;;  %p127_p4 = scmp.lt.s32.totalorder %s15_s10, %s15_s10 }
   0x9   :  { %p123_p3 = scmp.ne.s32.totalorder %s15_s10, %s122_s18  ;;  %p128_p5 = scmp.lt.s32.totalorder %s122_s18, %s122_s18 }
   0xb   :  { %p129_p6 = por %p128_p5, %p127_p4 }
   0xd   :  { %p130_p7 = pnand %p129_p6, %p123_p3 }
   0xf   :  { %133 = shalt.err (!%p130_p7)
}
  0x10   :  { %s161_s19 = smov 384   ;;  %s162_s20 = smov 24  }
  0x11   :  { %20 = dma.hbm_to_vmem [thread:$0]  %s212_s0, 768, %s15_s10, [#allocation3], %s161_s19, %s161_s19, %s162_s20  }
  0x12   :  { %156 = dma.done.wait [#allocation3], 768  }
  0x13   :  { %157 = vsyncadd [#allocation3], 4294966528  ;;  %v26_v0 = vld [vmem:[#allocation2] sm:$0xff]  ;;  %v27_v1 = vld [vmem:[#allocation2 + $0x8] sm:$0xff]  ;;  %v60_v18 = vlaneseq  ;;  %s163_s24 = smov [#allocation5]  }
  0x14   :  { %v28_v2 = vld [vmem:[#allocation2 + $0x10] sm:$0xff]  ;;  %v32_v3 = vmul.f32 %v26_v0, %v26_v0  ;;  %v33_v4 = vmul.f32 %v27_v1, %v27_v1  ;;  %v29_v6 = vld [vmem:[#allocation2 + $0x18] sm:$0xff]  ;;  %v30_v7 = vld [vmem:[#allocation2 + $0x20] sm:$0xff]  ;;  %s92_s25 = sshll.u32 %s163_s24, 4  ;;  %s93_s25 = int_to_ptr.vmem [resolvable:$true] %s92_s25 }
  0x15   :  { %v34_v5 = vmul.f32 %v28_v2, %v28_v2  ;;  %v31_v8 = vld [vmem:[#allocation2 + $0x28] sm:$0xff]  ;;  %v35_v9 = vmul.f32 %v29_v6, %v29_v6  ;;  %v36_v10 = vmul.f32 %v30_v7, %v30_v7  ;;  %v61_v22 = vshrl.u32 %v60_v18, 7  ;;  %v58_v27 = vld [vmem:[%s213_s1] sm:$0x7]  ;;  %s134_s1 = scalar_lea.vmem %s93_s25, 768  ;;  %p139_p9 = scmp.lt.s32.totalorder %s93_s25, %s93_s25 }
  0x16   :  { %v38_v11 = vadd.f32 %v33_v4, %v32_v3  ;;  %v37_v12 = vmul.f32 %v31_v8, %v31_v8  ;;  %p135_p8 = scmp.ne.s32.totalorder %s93_s25, %s134_s1  ;;  %p140_p10 = scmp.lt.s32.totalorder %s134_s1, %s134_s1 }
  0x17   :  { %v42_v13 = vadd.f32 %v36_v10, %v35_v9  ;;  %v62_v24 = vsub.s32 0, %v61_v22  ;;  %v66_v25 = vsub.s32 1, %v61_v22  ;;  %v70_v26 = vsub.s32 2, %v61_v22 }
  0x18   :  { %v39_v14 = vadd.f32 %v38_v11, %v34_v5  ;;  %p141_p11 = por %p140_p10, %p139_p9 }
  0x19   :  { %v43_v15 = vadd.f32 %v42_v13, %v37_v12  ;;  %v63_v28 = vrot.slane %v58_v27, %v62_v24  ;;  %v67_v29 = vrot.slane %v58_v27, %v66_v25  ;;  %v71_v30 = vrot.slane %v58_v27, %v70_v26 }
  0x1a   :  { %40 = vadd.xlane.f32.xlu0 %v39_v14  ;;  %p142_p12 = pnand %p141_p11, %p135_p8 }
  0x1e   :  { %44 = vadd.xlane.f32.xlu0 %v43_v15 }
  0xa7   :  { %v41_v16 = vpop.xlane.xlu0 %40 }
  0xa8   :  { %v46_v17 = vmul.f32 0.0026041667, %v41_v16 }
  0xaa   :  { %v48_v19 = vadd.f32 1e-06, %v46_v17 }
  0xab   :  { %v45_v20 = vpop.xlane.xlu0 %44 }
  0xac   :  { %108 = vrsqrt.f32 %v48_v19  ;;  %v47_v21 = vmul.f32 0.0026041667, %v45_v20 }
  0xae   :  { %v49_v23 = vadd.f32 1e-06, %v47_v21 }
  0xb0   :  { %110 = vrsqrt.f32 %v49_v23 }
  0xb6   :  { %v109_v31 = vpop.eup %108 }
  0xb7   :  { %v52_v32 = vmul.f32 %v109_v31, %v26_v0  ;;  %v53_v33 = vmul.f32 %v109_v31, %v27_v1  ;;  %v54_v34 = vmul.f32 %v109_v31, %v28_v2 }
  0xb9   :  { %v75_v35 = vmul.f32 %v63_v28, %v52_v32  ;;  %v76_v36 = vmul.f32 %v67_v29, %v53_v33  ;;  %v77_v37 = vmul.f32 %v71_v30, %v54_v34 }
  0xba   :  { %v111_v38 = vpop.eup %110 }
  0xbb   :  { %v55_v39 = vmul.f32 %v111_v38, %v29_v6  ;;  %v56_v40 = vmul.f32 %v111_v38, %v30_v7  ;;  %v57_v41 = vmul.f32 %v111_v38, %v31_v8  ;;  %81 = vst [vmem:[#allocation5] sm:$0xff] %v75_v35  ;;  %82 = vst [vmem:[#allocation5 + $0x8] sm:$0xff] %v76_v36 }
  0xbc   :  { %83 = vst [vmem:[#allocation5 + $0x10] sm:$0xff] %v77_v37 }
  0xbd   :  { %v78_v42 = vmul.f32 %v63_v28, %v55_v39  ;;  %v79_v43 = vmul.f32 %v67_v29, %v56_v40  ;;  %v80_v44 = vmul.f32 %v71_v30, %v57_v41 }
  0xbf   :  { %84 = vst [vmem:[#allocation5 + $0x18] sm:$0xff] %v78_v42  ;;  %85 = vst [vmem:[#allocation5 + $0x20] sm:$0xff] %v79_v43 }
  0xc0   :  { %86 = vst [vmem:[#allocation5 + $0x28] sm:$0xff] %v80_v44 }
  0xc1   :  { %145 = shalt.err (!%p142_p12)
}
  0xc2   :  { %s146_s28 = scalar_lea.hbm %s214_s2, 768 }
  0xc3   :  { %p147_p13 = scmp.ne.s32.totalorder %s214_s2, %s146_s28  ;;  %p150_p0 = scmp.lt.u32.totalorder %s146_s28, %s214_s2 }
  0xc5   :  { %p152_p1 = pnand %p150_p0, %p147_p13 }
  0xc7   :  { %155 = shalt.err (!%p152_p1)
}
  0xc8   :  { %98 = dma.vmem_to_hbm [thread:$0]  %s93_s25, 768, %s214_s2, [#allocation4], %s161_s19, %s161_s19, %s162_s20  }
  0xc9   :  { %158 = dma.done.wait [#allocation4], 768  }
  0xca   :  { %159 = vsyncadd [#allocation4], 4294966528 }
  0xcb   :  { %102 = vsyncpa [#allocation3], 1 }
  0xcc   :  { %103 = vsyncpa [#allocation4], 1 }

</bundles_post_ra>
